<compile_context>
chip_gen: v7x
topology: tpu7x:2x2x1
jax: 0.10.0
libtpu: 0.0.40
codegen_flags: <defaults>
</compile_context>

<pallas_src>
import math

import jax
import jax.numpy as jnp
import numpy as np
from jax.experimental import pallas as pl
from jax.experimental.pallas import tpu as pltpu

# ---- model / problem sizes (small, consistent with the module) ----
OBS_SIZE = 32        # obs_space_size (embed_dim), divisible by NUM_HEADS
ACTION_SIZE = 6      # action_space_size
NUM_HEADS = 2
HEAD_DIM = OBS_SIZE // NUM_HEADS
HID1 = 64 * 2        # linear: obs -> 128
HID2 = 64
HID3 = 32
SEQ = 8              # L
BATCH = 2            # N
LN_EPS = 1e-5
OUT_PAD = 128        # lane-dense padded action dim

# packed weight-slab row offsets (each block stored as (in_features, out_features))
_R_QKV = 0                     # (E, 3E)  = (32, 96)  [wq | wk | wv] side by side
_R_O = _R_QKV + OBS_SIZE       # (E, E)   = (32, 32)
_R_W1 = _R_O + OBS_SIZE        # (E, 128)
_R_W2 = _R_W1 + OBS_SIZE       # (128, 64)
_R_W3 = _R_W2 + HID1           # (64, 32)
_R_W4 = _R_W3 + HID2           # (32, 6)
W_ROWS = _R_W4 + HID3          # 320

# packed bias/vector-slab rows: one vector per row, 8 rows x 128 lanes = 1 vreg
_B_QKV, _B_O, _B_G, _B_BETA, _B_1, _B_2, _B_3, _B_4 = range(8)
B_ROWS = 8


def _actor_kernel(obs_ref, w_ref, b_ref, out_ref):
    E = OBS_SIZE
    x = obs_ref[...]                                   # (M, E) f32, row = l*N + n
    M = x.shape[0]
    xb = x.astype(jnp.bfloat16)

    # ---- MHA in-projection: one fused lane-dense (M, 3E) MXU dot ----
    qkv = jnp.dot(xb, w_ref[_R_QKV:_R_QKV + E, 0:3 * E],
                  preferred_element_type=jnp.float32)
    qkv = qkv + b_ref[_B_QKV:_B_QKV + 1, 0:3 * E]
    q = qkv[:, 0:E]
    k = qkv[:, E:2 * E]
    v = qkv[:, 2 * E:3 * E]

    # cross-batch mask: row r may attend to column c iff they belong to the
    # same batch element (r % N == c % N under the (L, N) -> (L*N) row order).
    rows = jax.lax.broadcasted_iota(jnp.int32, (M, M), 0)
    cols = jax.lax.broadcasted_iota(jnp.int32, (M, M), 1)
    same_batch = (rows % BATCH) == (cols % BATCH)

    scale = 1.0 / math.sqrt(HEAD_DIM)
    ctx_heads = []
    for h in range(NUM_HEADS):                         # static, fully unrolled
        lo = h * HEAD_DIM
        hi = lo + HEAD_DIM
        qh = q[:, lo:hi] * scale                       # (M, Dh) f32
        kh = k[:, lo:hi]
        vh = v[:, lo:hi]
        # scores = qh @ kh^T via contraction on last dims (no explicit transpose)
        s = jax.lax.dot_general(qh, kh, (((1,), (1,)), ((), ())),
                                preferred_element_type=jnp.float32)
        s = jnp.where(same_batch, s, jnp.float32(-1e30))
        m = jnp.max(s, axis=-1, keepdims=True)
        p = jnp.exp(s - m)
        denom = jnp.sum(p, axis=-1, keepdims=True)
        p = p * pl.reciprocal(denom, approx=True)      # EUP reciprocal (free slot)
        ctx_heads.append(jnp.dot(p, vh, preferred_element_type=jnp.float32))

    ctx = jnp.concatenate(ctx_heads, axis=-1)          # (M, E) lane-contiguous
    attn = jnp.dot(ctx.astype(jnp.bfloat16), w_ref[_R_O:_R_O + E, 0:E],
                   preferred_element_type=jnp.float32)
    attn = attn + b_ref[_B_O:_B_O + 1, 0:E]

    # ---- residual + LayerNorm(obs_space_size), f32 ----
    y = x + attn
    mean = jnp.mean(y, axis=-1, keepdims=True)
    var = jnp.mean((y - mean) * (y - mean), axis=-1, keepdims=True)
    yn = (y - mean) * jax.lax.rsqrt(var + LN_EPS)
    yn = yn * b_ref[_B_G:_B_G + 1, 0:E] + b_ref[_B_BETA:_B_BETA + 1, 0:E]

    # ---- Linear(E, 128) + ReLU ----
    z = jnp.dot(yn.astype(jnp.bfloat16), w_ref[_R_W1:_R_W1 + E, 0:HID1],
                preferred_element_type=jnp.float32) + b_ref[_B_1:_B_1 + 1, 0:HID1]
    z = jnp.maximum(z, 0.0)

    # ---- policy_layers: Linear(128,64)+ReLU, Dropout(identity), Linear(64,32)+ReLU, Linear(32,A) ----
    h1 = jnp.dot(z.astype(jnp.bfloat16), w_ref[_R_W2:_R_W2 + HID1, 0:HID2],
                 preferred_element_type=jnp.float32) + b_ref[_B_2:_B_2 + 1, 0:HID2]
    h1 = jnp.maximum(h1, 0.0)
    h2 = jnp.dot(h1.astype(jnp.bfloat16), w_ref[_R_W3:_R_W3 + HID2, 0:HID3],
                 preferred_element_type=jnp.float32) + b_ref[_B_3:_B_3 + 1, 0:HID3]
    h2 = jnp.maximum(h2, 0.0)
    logits = jnp.dot(h2.astype(jnp.bfloat16), w_ref[_R_W4:_R_W4 + HID3, :],
                     preferred_element_type=jnp.float32) + b_ref[_B_4:_B_4 + 1, :]

    out_ref[...] = logits                              # (M, 128) lane-dense store


def pack_params(p):
    """Pack all weights into one bf16 slab and all vectors into one f32 slab."""
    E, A = OBS_SIZE, ACTION_SIZE
    in_w = p["in_proj_w"]                              # (3E, E), PyTorch (out, in)
    w_qkv = jnp.concatenate(
        [in_w[:E].T, in_w[E:2 * E].T, in_w[2 * E:].T], axis=1)   # (E, 3E)

    W = jnp.zeros((W_ROWS, OUT_PAD), jnp.float32)
    W = W.at[_R_QKV:_R_QKV + E, 0:3 * E].set(w_qkv)
    W = W.at[_R_O:_R_O + E, 0:E].set(p["out_proj_w"].T)
    W = W.at[_R_W1:_R_W1 + E, 0:HID1].set(p["w1"].T)
    W = W.at[_R_W2:_R_W2 + HID1, 0:HID2].set(p["w2"].T)
    W = W.at[_R_W3:_R_W3 + HID2, 0:HID3].set(p["w3"].T)
    W = W.at[_R_W4:_R_W4 + HID3, 0:A].set(p["w4"].T)
    W = W.astype(jnp.bfloat16)

    B = jnp.zeros((B_ROWS, OUT_PAD), jnp.float32)
    B = B.at[_B_QKV, 0:3 * E].set(p["in_proj_b"])
    B = B.at[_B_O, 0:E].set(p["out_proj_b"])
    B = B.at[_B_G, 0:E].set(p["gamma"])
    B = B.at[_B_BETA, 0:E].set(p["beta"])
    B = B.at[_B_1, 0:HID1].set(p["b1"])
    B = B.at[_B_2, 0:HID2].set(p["b2"])
    B = B.at[_B_3, 0:HID3].set(p["b3"])
    B = B.at[_B_4, 0:A].set(p["b4"])
    return W, B


def mlp_actor_forward(obs_lne, w_packed, b_packed):
    """obs_lne: (L, N, E) seq-first f32 (PyTorch MHA default). Returns (L, N, A)."""
    L, N, E = obs_lne.shape
    M = L * N
    obs_2d = obs_lne.reshape(M, E)                     # row-major merge: no data movement

    out_padded = pl.pallas_call(
        _actor_kernel,
        grid=(1,),
        in_specs=[
            pl.BlockSpec((M, E), lambda i: (0, 0)),
            pl.BlockSpec((W_ROWS, OUT_PAD), lambda i: (0, 0)),
            pl.BlockSpec((B_ROWS, OUT_PAD), lambda i: (0, 0)),
        ],
        out_specs=pl.BlockSpec((M, OUT_PAD), lambda i: (0, 0)),
        out_shape=jax.ShapeDtypeStruct((M, OUT_PAD), jnp.float32),
        compiler_params=pltpu.CompilerParams(
            dimension_semantics=("arbitrary",)),
    )(obs_2d, w_packed, b_packed)

    return out_padded.reshape(L, N, OUT_PAD)[:, :, :ACTION_SIZE]


def reference_forward(obs, p):
    """Pure-JAX f32 reference matching PyTorch semantics (eval mode)."""
    L, N, E = obs.shape
    Dh = E // NUM_HEADS
    qkv = obs @ p["in_proj_w"].T + p["in_proj_b"]      # (L, N, 3E)
    q, k, v = jnp.split(qkv, 3, axis=-1)

    def to_heads(t):  # (L, N, E) -> (N, H, L, Dh)
        return jnp.transpose(t.reshape(L, N, NUM_HEADS, Dh), (1, 2, 0, 3))

    qh, kh, vh = to_heads(q), to_heads(k), to_heads(v)
    s = jnp.einsum("nhld,nhmd->nhlm", qh, kh) / math.sqrt(Dh)
    a = jax.nn.softmax(s, axis=-1)
    ctx = jnp.einsum("nhlm,nhmd->nhld", a, vh)         # (N, H, L, Dh)
    ctx = jnp.transpose(ctx, (2, 0, 1, 3)).reshape(L, N, E)
    attn = ctx @ p["out_proj_w"].T + p["out_proj_b"]

    y = obs + attn
    mean = y.mean(-1, keepdims=True)
    var = ((y - mean) ** 2).mean(-1, keepdims=True)
    yn = (y - mean) / jnp.sqrt(var + LN_EPS) * p["gamma"] + p["beta"]

    z = jax.nn.relu(yn @ p["w1"].T + p["b1"])
    h1 = jax.nn.relu(z @ p["w2"].T + p["b2"])          # dropout = identity (eval)
    h2 = jax.nn.relu(h1 @ p["w3"].T + p["b3"])
    return h2 @ p["w4"].T + p["b4"]


def init_params(key):
    E, A = OBS_SIZE, ACTION_SIZE

    def lin(k, fan_in, fan_out):
        bound = 1.0 / math.sqrt(fan_in)
        kw, kb = jax.random.split(k)
        w = jax.random.uniform(kw, (fan_out, fan_in), jnp.float32, -bound, bound)
        b = jax.random.uniform(kb, (fan_out,), jnp.float32, -bound, bound)
        return w, b

    ks = jax.random.split(key, 6)
    in_proj_w, in_proj_b = lin(ks[0], E, 3 * E)
    out_proj_w, out_proj_b = lin(ks[1], E, E)
    w1, b1 = lin(ks[2], E, HID1)
    w2, b2 = lin(ks[3], HID1, HID2)
    w3, b3 = lin(ks[4], HID2, HID3)
    w4, b4 = lin(ks[5], HID3, A)

    return dict(
        in_proj_w=in_proj_w, in_proj_b=in_proj_b,
        out_proj_w=out_proj_w, out_proj_b=out_proj_b,
        gamma=jnp.ones((E,), jnp.float32), beta=jnp.zeros((E,), jnp.float32),
        w1=w1, b1=b1, w2=w2, b2=b2, w3=w3, b3=b3, w4=w4, b4=b4,
    )


if __name__ == "__main__":
    key = jax.random.PRNGKey(0)
    k_param, k_obs = jax.random.split(key)
    params = init_params(k_param)
    w_packed, b_packed = pack_params(params)

    obs = jax.random.normal(k_obs, (SEQ, BATCH, OBS_SIZE), jnp.float32)

    fwd = jax.jit(mlp_actor_forward)
    out = jax.block_until_ready(fwd(obs, w_packed, b_packed))
    assert out.shape == (SEQ, BATCH, ACTION_SIZE), out.shape

    ref = jax.block_until_ready(reference_forward(obs, params))
    np.testing.assert_allclose(np.asarray(out), np.asarray(ref), rtol=5e-2, atol=5e-2)

    print("KERNEL_OK")
</pallas_src>

<mosaic_0001>
module attributes {stable_mosaic.version = 11 : i64} {
  func.func @_actor_kernel(%arg0: i32, %arg1: memref<16x32xf32, #tpu.memory_space<vmem>>, %arg2: memref<320x128xbf16, #tpu.memory_space<vmem>>, %arg3: memref<8x128xf32, #tpu.memory_space<vmem>>, %arg4: memref<16x128xf32, #tpu.memory_space<vmem>>) attributes {dimension_semantics = [#tpu.dimension_semantics<arbitrary>], iteration_bounds = array<i64: 1>, scalar_prefetch = 0 : i64, scratch_operands = 0 : i64, tpu.core_type = #tpu.core_type<tc>, window_params = [{pipeline_mode = #tpu.pipeline_mode<synchronous>, transform_indices = @transform_0, window_bounds = array<i64: 16, 32>}, {pipeline_mode = #tpu.pipeline_mode<synchronous>, transform_indices = @transform_1, window_bounds = array<i64: 320, 128>}, {pipeline_mode = #tpu.pipeline_mode<synchronous>, transform_indices = @transform_2, window_bounds = array<i64: 8, 128>}, {pipeline_mode = #tpu.pipeline_mode<synchronous>, transform_indices = @transform_3, window_bounds = array<i64: 16, 128>}]} {
    %c0 = arith.constant 0 : index
    %c0_0 = arith.constant 0 : index
    %0 = vector.load %arg1[%c0, %c0_0] : memref<16x32xf32, #tpu.memory_space<vmem>>, vector<16x32xf32>
    %1 = arith.truncf %0 : vector<16x32xf32> to vector<16x32xbf16>
    %c0_1 = arith.constant 0 : index
    %c0_2 = arith.constant 0 : index
    %2 = vector.load %arg2[%c0_1, %c0_2] : memref<320x128xbf16, #tpu.memory_space<vmem>>, vector<32x96xbf16>
    %cst = arith.constant dense<0.000000e+00> : vector<16x96xf32>
    %3 = tpu.matmul %1, %2, %cst {dimension_numbers = #tpu.dot_dimension_numbers<[1], [0], [0], [1], [0, 0, 1, 1], [], []>} : vector<16x32xbf16>, vector<32x96xbf16>, vector<16x96xf32> -> vector<16x96xf32>
    %c0_3 = arith.constant 0 : index
    %c0_4 = arith.constant 0 : index
    %4 = vector.load %arg3[%c0_3, %c0_4] : memref<8x128xf32, #tpu.memory_space<vmem>>, vector<1x96xf32>
    %5 = vector.broadcast %4 : vector<1x96xf32> to vector<16x96xf32>
    %6 = arith.addf %3, %5 : vector<16x96xf32>
    %7 = vector.extract_strided_slice %6 {offsets = [0, 0], sizes = [16, 32], strides = [1, 1]} : vector<16x96xf32> to vector<16x32xf32>
    %8 = vector.extract_strided_slice %6 {offsets = [0, 32], sizes = [16, 32], strides = [1, 1]} : vector<16x96xf32> to vector<16x32xf32>
    %9 = vector.extract_strided_slice %6 {offsets = [0, 64], sizes = [16, 32], strides = [1, 1]} : vector<16x96xf32> to vector<16x32xf32>
    %10 = tpu.iota {dimensions = array<i32: 0>} : vector<16x16xi32>
    %11 = tpu.iota {dimensions = array<i32: 1>} : vector<16x16xi32>
    %c2_i32 = arith.constant 2 : i32
    %c0_i32 = arith.constant 0 : i32
    %12 = arith.cmpi eq, %c2_i32, %c0_i32 : i32
    %c1_i32 = arith.constant 1 : i32
    %13 = arith.select %12, %c1_i32, %c2_i32 : i32
    %14 = vector.broadcast %13 : i32 to vector<16x16xi32>
    %15 = arith.remsi %10, %14 : vector<16x16xi32>
    %c0_i32_5 = arith.constant 0 : i32
    %16 = vector.broadcast %c0_i32_5 : i32 to vector<16x16xi32>
    %17 = arith.cmpi ne, %15, %16 : vector<16x16xi32>
    %c0_i32_6 = arith.constant 0 : i32
    %18 = vector.broadcast %c0_i32_6 : i32 to vector<16x16xi32>
    %19 = arith.cmpi slt, %15, %18 : vector<16x16xi32>
    %c0_i32_7 = arith.constant 0 : i32
    %20 = arith.cmpi slt, %13, %c0_i32_7 : i32
    %21 = vector.broadcast %20 : i1 to vector<16x16xi1>
    %22 = vector.broadcast %21 : vector<16x16xi1> to vector<16x16xi1>
    %23 = arith.xori %19, %22 : vector<16x16xi1>
    %24 = arith.andi %23, %17 : vector<16x16xi1>
    %25 = vector.broadcast %13 : i32 to vector<16x16xi32>
    %26 = arith.addi %15, %25 : vector<16x16xi32>
    %27 = arith.select %24, %26, %15 : vector<16x16xi1>, vector<16x16xi32>
    %c2_i32_8 = arith.constant 2 : i32
    %c0_i32_9 = arith.constant 0 : i32
    %28 = arith.cmpi eq, %c2_i32_8, %c0_i32_9 : i32
    %c1_i32_10 = arith.constant 1 : i32
    %29 = arith.select %28, %c1_i32_10, %c2_i32_8 : i32
    %30 = vector.broadcast %29 : i32 to vector<16x16xi32>
    %31 = arith.remsi %11, %30 : vector<16x16xi32>
    %c0_i32_11 = arith.constant 0 : i32
    %32 = vector.broadcast %c0_i32_11 : i32 to vector<16x16xi32>
    %33 = arith.cmpi ne, %31, %32 : vector<16x16xi32>
    %c0_i32_12 = arith.constant 0 : i32
    %34 = vector.broadcast %c0_i32_12 : i32 to vector<16x16xi32>
    %35 = arith.cmpi slt, %31, %34 : vector<16x16xi32>
    %c0_i32_13 = arith.constant 0 : i32
    %36 = arith.cmpi slt, %29, %c0_i32_13 : i32
    %37 = vector.broadcast %36 : i1 to vector<16x16xi1>
    %38 = vector.broadcast %37 : vector<16x16xi1> to vector<16x16xi1>
    %39 = arith.xori %35, %38 : vector<16x16xi1>
    %40 = arith.andi %39, %33 : vector<16x16xi1>
    %41 = vector.broadcast %29 : i32 to vector<16x16xi32>
    %42 = arith.addi %31, %41 : vector<16x16xi32>
    %43 = arith.select %40, %42, %31 : vector<16x16xi1>, vector<16x16xi32>
    %44 = arith.cmpi eq, %27, %43 : vector<16x16xi32>
    %45 = vector.extract_strided_slice %7 {offsets = [0, 0], sizes = [16, 16], strides = [1, 1]} : vector<16x32xf32> to vector<16x16xf32>
    %cst_14 = arith.constant 2.500000e-01 : f32
    %46 = vector.broadcast %cst_14 : f32 to vector<16x16xf32>
    %47 = arith.mulf %45, %46 : vector<16x16xf32>
    %48 = vector.extract_strided_slice %8 {offsets = [0, 0], sizes = [16, 16], strides = [1, 1]} : vector<16x32xf32> to vector<16x16xf32>
    %49 = vector.extract_strided_slice %9 {offsets = [0, 0], sizes = [16, 16], strides = [1, 1]} : vector<16x32xf32> to vector<16x16xf32>
    %cst_15 = arith.constant dense<0.000000e+00> : vector<16x16xf32>
    %50 = tpu.matmul %47, %48, %cst_15 {dimension_numbers = #tpu.dot_dimension_numbers<[1], [1], [0], [0], [0, 0, 1, 0], [], []>} : vector<16x16xf32>, vector<16x16xf32>, vector<16x16xf32> -> vector<16x16xf32>
    %cst_16 = arith.constant -1.000000e+30 : f32
    %51 = vector.broadcast %cst_16 : f32 to vector<16x16xf32>
    %52 = arith.select %44, %50, %51 : vector<16x16xi1>, vector<16x16xf32>
    %cst_17 = arith.constant dense<0xFF800000> : vector<16xf32>
    %53 = vector.multi_reduction <maximumf>, %52, %cst_17 [1] : vector<16x16xf32> to vector<16xf32>
    %54 = vector.shape_cast %53 : vector<16xf32> to vector<16x1xf32>
    %55 = vector.broadcast %54 : vector<16x1xf32> to vector<16x16xf32>
    %56 = arith.subf %52, %55 : vector<16x16xf32>
    %57 = math.exp %56 : vector<16x16xf32>
    %cst_18 = arith.constant dense<0.000000e+00> : vector<16xf32>
    %58 = vector.multi_reduction <add>, %57, %cst_18 [1] : vector<16x16xf32> to vector<16xf32>
    %59 = vector.shape_cast %58 : vector<16xf32> to vector<16x1xf32>
    %60 = tpu.reciprocal %59 {approx = true} : vector<16x1xf32> -> vector<16x1xf32>
    %61 = vector.broadcast %60 : vector<16x1xf32> to vector<16x16xf32>
    %62 = arith.mulf %57, %61 : vector<16x16xf32>
    %cst_19 = arith.constant dense<0.000000e+00> : vector<16x16xf32>
    %63 = tpu.matmul %62, %49, %cst_19 {dimension_numbers = #tpu.dot_dimension_numbers<[1], [0], [0], [1], [0, 0, 1, 1], [], []>} : vector<16x16xf32>, vector<16x16xf32>, vector<16x16xf32> -> vector<16x16xf32>
    %64 = vector.extract_strided_slice %7 {offsets = [0, 16], sizes = [16, 16], strides = [1, 1]} : vector<16x32xf32> to vector<16x16xf32>
    %cst_20 = arith.constant 2.500000e-01 : f32
    %65 = vector.broadcast %cst_20 : f32 to vector<16x16xf32>
    %66 = arith.mulf %64, %65 : vector<16x16xf32>
    %67 = vector.extract_strided_slice %8 {offsets = [0, 16], sizes = [16, 16], strides = [1, 1]} : vector<16x32xf32> to vector<16x16xf32>
    %68 = vector.extract_strided_slice %9 {offsets = [0, 16], sizes = [16, 16], strides = [1, 1]} : vector<16x32xf32> to vector<16x16xf32>
    %cst_21 = arith.constant dense<0.000000e+00> : vector<16x16xf32>
    %69 = tpu.matmul %66, %67, %cst_21 {dimension_numbers = #tpu.dot_dimension_numbers<[1], [1], [0], [0], [0, 0, 1, 0], [], []>} : vector<16x16xf32>, vector<16x16xf32>, vector<16x16xf32> -> vector<16x16xf32>
    %cst_22 = arith.constant -1.000000e+30 : f32
    %70 = vector.broadcast %cst_22 : f32 to vector<16x16xf32>
    %71 = arith.select %44, %69, %70 : vector<16x16xi1>, vector<16x16xf32>
    %cst_23 = arith.constant dense<0xFF800000> : vector<16xf32>
    %72 = vector.multi_reduction <maximumf>, %71, %cst_23 [1] : vector<16x16xf32> to vector<16xf32>
    %73 = vector.shape_cast %72 : vector<16xf32> to vector<16x1xf32>
    %74 = vector.broadcast %73 : vector<16x1xf32> to vector<16x16xf32>
    %75 = arith.subf %71, %74 : vector<16x16xf32>
    %76 = math.exp %75 : vector<16x16xf32>
    %cst_24 = arith.constant dense<0.000000e+00> : vector<16xf32>
    %77 = vector.multi_reduction <add>, %76, %cst_24 [1] : vector<16x16xf32> to vector<16xf32>
    %78 = vector.shape_cast %77 : vector<16xf32> to vector<16x1xf32>
    %79 = tpu.reciprocal %78 {approx = true} : vector<16x1xf32> -> vector<16x1xf32>
    %80 = vector.broadcast %79 : vector<16x1xf32> to vector<16x16xf32>
    %81 = arith.mulf %76, %80 : vector<16x16xf32>
    %cst_25 = arith.constant dense<0.000000e+00> : vector<16x16xf32>
    %82 = tpu.matmul %81, %68, %cst_25 {dimension_numbers = #tpu.dot_dimension_numbers<[1], [0], [0], [1], [0, 0, 1, 1], [], []>} : vector<16x16xf32>, vector<16x16xf32>, vector<16x16xf32> -> vector<16x16xf32>
    %83 = tpu.concatenate %63, %82 in 1 : vector<16x16xf32>, vector<16x16xf32> -> vector<16x32xf32>
    %84 = arith.truncf %83 : vector<16x32xf32> to vector<16x32xbf16>
    %c32 = arith.constant 32 : index
    %c0_26 = arith.constant 0 : index
    %85 = vector.load %arg2[%c32, %c0_26] : memref<320x128xbf16, #tpu.memory_space<vmem>>, vector<32x32xbf16>
    %cst_27 = arith.constant dense<0.000000e+00> : vector<16x32xf32>
    %86 = tpu.matmul %84, %85, %cst_27 {dimension_numbers = #tpu.dot_dimension_numbers<[1], [0], [0], [1], [0, 0, 1, 1], [], []>} : vector<16x32xbf16>, vector<32x32xbf16>, vector<16x32xf32> -> vector<16x32xf32>
    %c1 = arith.constant 1 : index
    %c0_28 = arith.constant 0 : index
    %87 = vector.load %arg3[%c1, %c0_28] : memref<8x128xf32, #tpu.memory_space<vmem>>, vector<1x32xf32>
    %88 = vector.broadcast %87 : vector<1x32xf32> to vector<16x32xf32>
    %89 = arith.addf %86, %88 : vector<16x32xf32>
    %90 = arith.addf %0, %89 : vector<16x32xf32>
    %cst_29 = arith.constant dense<0.000000e+00> : vector<16xf32>
    %91 = vector.multi_reduction <add>, %90, %cst_29 [1] : vector<16x32xf32> to vector<16xf32>
    %92 = vector.shape_cast %91 : vector<16xf32> to vector<16x1xf32>
    %cst_30 = arith.constant 3.200000e+01 : f32
    %93 = vector.broadcast %cst_30 : f32 to vector<16x1xf32>
    %94 = arith.divf %92, %93 : vector<16x1xf32>
    %95 = vector.broadcast %94 : vector<16x1xf32> to vector<16x32xf32>
    %96 = arith.subf %90, %95 : vector<16x32xf32>
    %97 = vector.broadcast %94 : vector<16x1xf32> to vector<16x32xf32>
    %98 = arith.subf %90, %97 : vector<16x32xf32>
    %99 = arith.mulf %96, %98 : vector<16x32xf32>
    %cst_31 = arith.constant dense<0.000000e+00> : vector<16xf32>
    %100 = vector.multi_reduction <add>, %99, %cst_31 [1] : vector<16x32xf32> to vector<16xf32>
    %101 = vector.shape_cast %100 : vector<16xf32> to vector<16x1xf32>
    %cst_32 = arith.constant 3.200000e+01 : f32
    %102 = vector.broadcast %cst_32 : f32 to vector<16x1xf32>
    %103 = arith.divf %101, %102 : vector<16x1xf32>
    %104 = vector.broadcast %94 : vector<16x1xf32> to vector<16x32xf32>
    %105 = arith.subf %90, %104 : vector<16x32xf32>
    %cst_33 = arith.constant 9.99999974E-6 : f32
    %106 = vector.broadcast %cst_33 : f32 to vector<16x1xf32>
    %107 = arith.addf %103, %106 : vector<16x1xf32>
    %108 = math.rsqrt %107 : vector<16x1xf32>
    %109 = vector.broadcast %108 : vector<16x1xf32> to vector<16x32xf32>
    %110 = arith.mulf %105, %109 : vector<16x32xf32>
    %c2 = arith.constant 2 : index
    %c0_34 = arith.constant 0 : index
    %111 = vector.load %arg3[%c2, %c0_34] : memref<8x128xf32, #tpu.memory_space<vmem>>, vector<1x32xf32>
    %112 = vector.broadcast %111 : vector<1x32xf32> to vector<16x32xf32>
    %113 = arith.mulf %110, %112 : vector<16x32xf32>
    %c3 = arith.constant 3 : index
    %c0_35 = arith.constant 0 : index
    %114 = vector.load %arg3[%c3, %c0_35] : memref<8x128xf32, #tpu.memory_space<vmem>>, vector<1x32xf32>
    %115 = vector.broadcast %114 : vector<1x32xf32> to vector<16x32xf32>
    %116 = arith.addf %113, %115 : vector<16x32xf32>
    %117 = arith.truncf %116 : vector<16x32xf32> to vector<16x32xbf16>
    %c64 = arith.constant 64 : index
    %c0_36 = arith.constant 0 : index
    %118 = vector.load %arg2[%c64, %c0_36] : memref<320x128xbf16, #tpu.memory_space<vmem>>, vector<32x128xbf16>
    %cst_37 = arith.constant dense<0.000000e+00> : vector<16x128xf32>
    %119 = tpu.matmul %117, %118, %cst_37 {dimension_numbers = #tpu.dot_dimension_numbers<[1], [0], [0], [1], [0, 0, 1, 1], [], []>} : vector<16x32xbf16>, vector<32x128xbf16>, vector<16x128xf32> -> vector<16x128xf32>
    %c4 = arith.constant 4 : index
    %c0_38 = arith.constant 0 : index
    %120 = vector.load %arg3[%c4, %c0_38] : memref<8x128xf32, #tpu.memory_space<vmem>>, vector<1x128xf32>
    %121 = vector.broadcast %120 : vector<1x128xf32> to vector<16x128xf32>
    %122 = arith.addf %119, %121 : vector<16x128xf32>
    %cst_39 = arith.constant 0.000000e+00 : f32
    %123 = vector.broadcast %cst_39 : f32 to vector<16x128xf32>
    %124 = arith.maximumf %122, %123 : vector<16x128xf32>
    %125 = arith.truncf %124 : vector<16x128xf32> to vector<16x128xbf16>
    %c96 = arith.constant 96 : index
    %c0_40 = arith.constant 0 : index
    %126 = vector.load %arg2[%c96, %c0_40] : memref<320x128xbf16, #tpu.memory_space<vmem>>, vector<128x64xbf16>
    %cst_41 = arith.constant dense<0.000000e+00> : vector<16x64xf32>
    %127 = tpu.matmul %125, %126, %cst_41 {dimension_numbers = #tpu.dot_dimension_numbers<[1], [0], [0], [1], [0, 0, 1, 1], [], []>} : vector<16x128xbf16>, vector<128x64xbf16>, vector<16x64xf32> -> vector<16x64xf32>
    %c5 = arith.constant 5 : index
    %c0_42 = arith.constant 0 : index
    %128 = vector.load %arg3[%c5, %c0_42] : memref<8x128xf32, #tpu.memory_space<vmem>>, vector<1x64xf32>
    %129 = vector.broadcast %128 : vector<1x64xf32> to vector<16x64xf32>
    %130 = arith.addf %127, %129 : vector<16x64xf32>
    %cst_43 = arith.constant 0.000000e+00 : f32
    %131 = vector.broadcast %cst_43 : f32 to vector<16x64xf32>
    %132 = arith.maximumf %130, %131 : vector<16x64xf32>
    %133 = arith.truncf %132 : vector<16x64xf32> to vector<16x64xbf16>
    %c224 = arith.constant 224 : index
    %c0_44 = arith.constant 0 : index
    %134 = vector.load %arg2[%c224, %c0_44] : memref<320x128xbf16, #tpu.memory_space<vmem>>, vector<64x32xbf16>
    %cst_45 = arith.constant dense<0.000000e+00> : vector<16x32xf32>
    %135 = tpu.matmul %133, %134, %cst_45 {dimension_numbers = #tpu.dot_dimension_numbers<[1], [0], [0], [1], [0, 0, 1, 1], [], []>} : vector<16x64xbf16>, vector<64x32xbf16>, vector<16x32xf32> -> vector<16x32xf32>
    %c6 = arith.constant 6 : index
    %c0_46 = arith.constant 0 : index
    %136 = vector.load %arg3[%c6, %c0_46] : memref<8x128xf32, #tpu.memory_space<vmem>>, vector<1x32xf32>
    %137 = vector.broadcast %136 : vector<1x32xf32> to vector<16x32xf32>
    %138 = arith.addf %135, %137 : vector<16x32xf32>
    %cst_47 = arith.constant 0.000000e+00 : f32
    %139 = vector.broadcast %cst_47 : f32 to vector<16x32xf32>
    %140 = arith.maximumf %138, %139 : vector<16x32xf32>
    %141 = arith.truncf %140 : vector<16x32xf32> to vector<16x32xbf16>
    %c288 = arith.constant 288 : index
    %c0_48 = arith.constant 0 : index
    %142 = vector.load %arg2[%c288, %c0_48] : memref<320x128xbf16, #tpu.memory_space<vmem>>, vector<32x128xbf16>
    %cst_49 = arith.constant dense<0.000000e+00> : vector<16x128xf32>
    %143 = tpu.matmul %141, %142, %cst_49 {dimension_numbers = #tpu.dot_dimension_numbers<[1], [0], [0], [1], [0, 0, 1, 1], [], []>} : vector<16x32xbf16>, vector<32x128xbf16>, vector<16x128xf32> -> vector<16x128xf32>
    %c7 = arith.constant 7 : index
    %c0_50 = arith.constant 0 : index
    %144 = vector.load %arg3[%c7, %c0_50] : memref<8x128xf32, #tpu.memory_space<vmem>>, vector<1x128xf32>
    %145 = vector.broadcast %144 : vector<1x128xf32> to vector<16x128xf32>
    %146 = arith.addf %143, %145 : vector<16x128xf32>
    %c0_51 = arith.constant 0 : index
    %c0_52 = arith.constant 0 : index
    %147 = vector.load %arg4[%c0_51, %c0_52] : memref<16x128xf32, #tpu.memory_space<vmem>>, vector<16x128xf32>
    tpu.vector_store %arg4[%c0_51, %c0_52], %146 {strides = array<i32>} : memref<16x128xf32, #tpu.memory_space<vmem>>, vector<16x128xf32>,
    return
  }
  func.func @transform_0(%arg0: i32) -> (i32, i32) {
    %c0_i32 = arith.constant 0 : i32
    %c0_i32_0 = arith.constant 0 : i32
    %c0_i32_1 = arith.constant 0 : i32
    return %c0_i32, %c0_i32_0 : i32, i32
  }
  func.func @transform_1(%arg0: i32) -> (i32, i32) {
    %c0_i32 = arith.constant 0 : i32
    %c0_i32_0 = arith.constant 0 : i32
    %c0_i32_1 = arith.constant 0 : i32
    return %c0_i32, %c0_i32_0 : i32, i32
  }
  func.func @transform_2(%arg0: i32) -> (i32, i32) {
    %c0_i32 = arith.constant 0 : i32
    %c0_i32_0 = arith.constant 0 : i32
    %c0_i32_1 = arith.constant 0 : i32
    return %c0_i32, %c0_i32_0 : i32, i32
  }
  func.func @transform_3(%arg0: i32) -> (i32, i32) {
    %c0_i32 = arith.constant 0 : i32
    %c0_i32_0 = arith.constant 0 : i32
    %c0_i32_1 = arith.constant 0 : i32
    return %c0_i32, %c0_i32_0 : i32, i32
  }
}

</mosaic_0001>

<bundles_post_ra>
// kernel: mlp_actor_forward.1
= control target key start
LH: loop header
LB: loop body
LE: loop exit
PB: predicated region body
PF: predicated region fallthrough
CT: control target
= control target key end

     0   :  { %8 = vsyncpa [#allocation3], 0  ;;  %s1510_s0 = inlined_call_operand.hbm [shape: f32[16,32], index: 0, kind: input, shape index: {}]   ;;  %s1511_s1 = inlined_call_operand.hbm [shape: bf16[320,128], index: 1, kind: input, shape index: {}]   ;;  %s1512_s2 = inlined_call_operand.vmem [shape: f32[8,128], index: 2, kind: input, shape index: {}]   ;;  %s1513_s3 = inlined_call_operand.vmem [shape: f32[16,128], index: 3, kind: output, shape index: {}]  }
   0x1   :  { %9 = vsyncpa [#allocation5], 0  ;;  %s1346_s12 = smov [#allocation2]   ;;  %s1298_s16 = scalar_lea.hbm %s1510_s0, 256 }
   0x2   :  { %s15_s13 = sshll.u32 %s1346_s12, 4  ;;  %p1299_p0 = scmp.ne.s32.totalorder %s1510_s0, %s1298_s16  ;;  %s16_s13 = int_to_ptr.vmem [resolvable:$true] %s15_s13 }
   0x3   :  { %p1302_p1 = scmp.lt.u32.totalorder %s1298_s16, %s1510_s0 }
   0x5   :  { %p1304_p2 = pnand %p1302_p1, %p1299_p0 }
   0x7   :  { %1307 = shalt.err (!%p1304_p2)
}
   0x8   :  { %s1308_s21 = scalar_lea.vmem %s16_s13, 256  ;;  %p1313_p4 = scmp.lt.s32.totalorder %s16_s13, %s16_s13 }
   0x9   :  { %p1309_p3 = scmp.ne.s32.totalorder %s16_s13, %s1308_s21  ;;  %p1314_p5 = scmp.lt.s32.totalorder %s1308_s21, %s1308_s21 }
   0xb   :  { %p1315_p6 = por %p1314_p5, %p1313_p4 }
   0xd   :  { %p1316_p7 = pnand %p1315_p6, %p1309_p3 }
   0xf   :  { %1319 = shalt.err (!%p1316_p7)
}
  0x10   :  { %s1347_s22 = smov 128   ;;  %s1348_s23 = smov 8  }
  0x11   :  { %21 = dma.hbm_to_vmem [thread:$0]  %s1510_s0, 256, %s16_s13, [#allocation3], %s1347_s22, %s1347_s22, %s1348_s23  }
  0x12   :  { %s1349_s26 = smov [#allocation4]   ;;  %s1320_s30 = scalar_lea.hbm %s1511_s1, 2560 }
  0x13   :  { %s27_s27 = sshll.u32 %s1349_s26, 4  ;;  %p1321_p8 = scmp.ne.s32.totalorder %s1511_s1, %s1320_s30  ;;  %s28_s27 = int_to_ptr.vmem [resolvable:$true] %s27_s27 }
  0x14   :  { %p1324_p9 = scmp.lt.u32.totalorder %s1320_s30, %s1511_s1 }
  0x16   :  { %p1326_p10 = pnand %p1324_p9, %p1321_p8 }
  0x18   :  { %1329 = shalt.err (!%p1326_p10)
}
  0x19   :  { %s1330_s8 = scalar_lea.vmem %s28_s27, 2560  ;;  %p1335_p12 = scmp.lt.s32.totalorder %s28_s27, %s28_s27 }
  0x1a   :  { %p1331_p11 = scmp.ne.s32.totalorder %s28_s27, %s1330_s8  ;;  %p1336_p13 = scmp.lt.s32.totalorder %s1330_s8, %s1330_s8 }
  0x1c   :  { %p1337_p0 = por %p1336_p13, %p1335_p12 }
  0x1e   :  { %p1338_p1 = pnand %p1337_p0, %p1331_p11 }
  0x20   :  { %1341 = shalt.err (!%p1338_p1)
}
  0x21   :  { %s1350_s0 = smov 64   ;;  %s1351_s9 = smov 4  }
  0x22   :  { %33 = dma.hbm_to_vmem [thread:$0]  %s1511_s1, 2560, %s28_s27, [#allocation5], %s1350_s0, %s1350_s0, %s1351_s9  }
  0x23   :  { %1342 = dma.done.wait [#allocation3], 256  }
  0x24   :  { %1343 = vsyncadd [#allocation3], 4294967040 }
  0x25   :  { %1344 = dma.done.wait [#allocation5], 2560  }
  0x26   :  { %1345 = vsyncadd [#allocation5], 4294964736  ;;  %v1352_v0 = vmov 0.0   ;;  %vm1353_vm0 = vmmov 0   ;;  %v1258_v1 = vld [vmem:[#allocation4] sm:$0xff]   ;;  %v1259_v2 = vld [vmem:[#allocation4 + $0x8] sm:$0xff]   ;;  %v112_v26 = vlaneseq }
  0x27   :  { %1108 = vmatprep.subr.bf16.mxu0 %v1352_v0  ;;  %1112 = vmatprep.mubr.msk.bf16.mxu0 %vm1353_vm0, %v1352_v0  ;;  %v1408_v3 = vld [vmem:[#allocation2] sm:$0xff]  ;;  %v1410_v4 = vld [vmem:[#allocation2 + $0x8] sm:$0xff]  ;;  %vm67_vm1 = vcmask 261120   ;;  %vm163_vm2 = vcmask 130048   ;;  %s1354_s13 = smov 112   ;;  %s1355_s14 = smov 96  }
  0x28   :  { %1109 = vmatpush3.bf16.msra.mxu0 %v1258_v1  ;;  %v45_v5 = vpack.c.bf16 %v1410_v4, %v1408_v3  ;;  %v1021_v6 = vld [vmem:[%s1512_s2] ss:$0 sm:$0xff]  ;;  %s1356_s15 = smov 80   ;;  %vm1201_vm3 = vmpackc.low %vm163_vm2, %vm163_vm2  ;;  %v113_v27 = vshrl.u32 %v112_v26, 7  ;;  %v116_v29 = vand.u32 127, %v112_v26  ;;  %s1357_s16 = smov 48  }
  0x29   :  { %1110 = vmatprep.subr.bf16.mxu0 %v1352_v0  ;;  %s1358_s17 = smov 16   ;;  %vm900_vm6 = vcmask 523264  }
  0x2a   :  { %v114_v28 = vadd.s32 8, %v113_v27  ;;  %v145_v31 = vand.u32 1, %v116_v29  ;;  %v121_v32 = vand.u32 1, %v113_v27 }
  0x2c   :  { %1111 = vmatpush3.bf16.msra.mxu0 %v1259_v2  ;;  %v128_v30 = vand.u32 1, %v114_v28  ;;  %vm153_vm5 = vcmp.eq.s32.totalorder %v121_v32, %v145_v31 }
  0x2e   :  { %vm154_vm4 = vcmp.eq.s32.totalorder %v128_v30, %v145_v31 }
  0x2f   :  { %1113 = vmatmul.mubr.msk.bf16.vlgmr.msra.gmra.mrb[0].mxu0 %vm67_vm1, %v45_v5 }
 0x102   :  { %v105_v7 = vpop.f32.mrb[0].mxu0 }
 0x103   :  { %v106_v8 = vadd.f32 %v1021_v6, %v105_v7  ;;  %v1114_v9 = vpop.f32.mrb[1].mxu0 }
 0x104   :  { %v108_v10 = vpop.f32.mrb[2].mxu0 }
 0x105   :  { %v109_v11 = vadd.f32 %v1021_v6, %v108_v10  ;;  %v1115_v12 = vpop.f32.mrb[3].mxu0  ;;  %v155_v13 = vmul.f32 0.25, %v106_v8 }
 0x107   :  { %360 = vrot.lane.b32.xlu1 %v155_v13, %s1354_s13  ;;  %1120 = vmatprep.mubr.msk.f32.mxu1 %vm163_vm2, %v155_v13  ;;  %v1420_v14 = vpack.i.bf16 %v109_v11, %v106_v8  ;;  %v156_v15 = vmul.f32 0.25, %v109_v11 }
 0x109   :  { %1234 = vrot.lane.b32.xlu0 %v1420_v14, %s1355_s14 }
 0x10b   :  { %362 = vrot.lane.b32.xlu1 %v156_v15, %s1354_s13 }
 0x10d   :  { %1239 = vrot.lane.b32.xlu0 %v1420_v14, %s1356_s15 }
 0x179   :  { %v361_v16 = vpop.permute.xlu1 %360 }
 0x17a   :  { %1134 = vmatprep.mubr.msk.f32.mxu0 %vm163_vm2, %v361_v16 }
 0x17b   :  { %v1235_v17 = vpop.permute.xlu0 %1234 }
 0x17c   :  { %v1237_v18 = vunpack.i.h.bf16 %v1235_v17  ;;  %v1236_v19 = vunpack.i.l.bf16 %v1235_v17 }
 0x17d   :  { %v363_v25 = vpop.permute.xlu1 %362 }
 0x17e   :  { %v1200_v20 = vpack.c.bf16 %v1237_v18, %v1236_v19 }
 0x17f   :  { %v1240_v21 = vpop.permute.xlu0 %1239 }
 0x180   :  { %v1242_v22 = vunpack.i.h.bf16 %v1240_v21  ;;  %v1241_v23 = vunpack.i.l.bf16 %v1240_v21  ;;  %1202 = vmatprep.subr.msk.bf16.mxu1 %vm1201_vm3, %v1200_v20 }
 0x181   :  { %1205 = vmatpush3.bf16.xpose.msk.msra.mxu1 %vm1201_vm3, %v1200_v20 }
 0x182   :  { %v1210_v24 = vpack.c.bf16 %v1242_v22, %v1241_v23 }
 0x184   :  { %1212 = vmatprep.subr.msk.bf16.mxu0 %vm1201_vm3, %v1210_v24 }
 0x185   :  { %1215 = vmatpush3.bf16.xpose.msk.msra.mxu0 %vm1201_vm3, %v1210_v24  ;;  %v1260_v24 = vld [vmem:[#allocation4 + $0x10] sm:$0xff]  }
 0x186   :  { %1144 = vmatprep.subr.bf16.mxu0 %v1352_v0 }
 0x188   :  { %1121 = vmatmul.mubr.msk.f32.vlgmr.msra.gmra.mrb[0].mxu1 %vm163_vm2, %v156_v15 }
 0x18c   :  { %1135 = vmatmul.mubr.msk.f32.vlgmr.msra.gmra.mrb[4].mxu0 %vm163_vm2, %v363_v25  ;;  %v1261_v25 = vld [vmem:[#allocation4 + $0x18] sm:$0xff]  }
 0x18d   :  { %1148 = vmatprep.mubr.msk.bf16.mxu0 %vm1353_vm0, %v1352_v0  ;;  %1145 = vmatpush3.bf16.msra.mxu0 %v1260_v24  ;;  %v1043_v24 = vld [vmem:[%s1512_s2 + $0x4] ss:$0 sm:$0xff] }
 0x18e   :  { %1146 = vmatprep.subr.bf16.mxu0 %v1352_v0 }
 0x191   :  { %1147 = vmatpush3.bf16.msra.mxu0 %v1261_v25 }
 0x192   :  { %1160 = vmatprep.subr.bf16.mxu0 %v1352_v0 }
 0x25b   :  { %v1122_v33 = vpop.f32.mrb[0].mxu1 }
 0x25c   :  { %v250_v34 = vsel %vm154_vm4, %v1122_v33, -1e+30  ;;  %v240_v35 = vpop.f32.mrb[1].mxu1 }
 0x25d   :  { %v249_v36 = vsel %vm153_vm5, %v240_v35, -1e+30  ;;  %v254_v37 = vsel %vm163_vm2, %v250_v34, -inf }
 0x25e   :  { %255 = vmax.xlane.f32.xlu1 %v254_v37  ;;  %v251_v38 = vsel %vm163_vm2, %v249_v36, -inf  ;;  %v1037_v37 = vld [vmem:[%s1512_s2 + $0x1] ss:$0 sm:$0xff] }
 0x25f   :  { %252 = vmax.xlane.f32.xlu0 %v251_v38  ;;  %v1136_v39 = vpop.f32.mrb[4].mxu0 }
 0x260   :  { %v442_v40 = vpop.f32.mrb[5].mxu0  ;;  %v452_v43 = vsel %vm154_vm4, %v1136_v39, -1e+30 }
 0x261   :  { %v451_v41 = vsel %vm153_vm5, %v442_v40, -1e+30  ;;  %v456_v44 = vsel %vm163_vm2, %v452_v43, -inf }
 0x262   :  { %v453_v42 = vsel %vm163_vm2, %v451_v41, -inf }
 0x263   :  { %454 = vmax.xlane.f32.xlu0 %v453_v42 }
 0x267   :  { %457 = vmax.xlane.f32.xlu0 %v456_v44 }
 0x2eb   :  { %v256_v45 = vpop.xlane.xlu1 %255 }
 0x2ec   :  { %v258_v46 = vsub.f32 %v250_v34, %v256_v45  ;;  %v253_v47 = vpop.xlane.xlu0 %252 }
 0x2ed   :  { %v257_v48 = vsub.f32 %v249_v36, %v253_v47 }
 0x2ee   :  { %v261_v49 = vmul.f32 1.442695, %v258_v46 }
 0x2ef   :  { %v259_v50 = vmul.f32 1.442695, %v257_v48 }
 0x2f0   :  { %1278 = vpow2.f32 %v261_v49  ;;  %v455_v51 = vpop.xlane.xlu0 %454 }
 0x2f1   :  { %1280 = vpow2.f32 %v259_v50  ;;  %v459_v52 = vsub.f32 %v451_v41, %v455_v51 }
 0x2f3   :  { %v461_v53 = vmul.f32 1.442695, %v459_v52 }
 0x2f4   :  { %v458_v54 = vpop.xlane.xlu0 %457 }
 0x2f5   :  { %1282 = vpow2.f32 %v461_v53  ;;  %v460_v55 = vsub.f32 %v452_v43, %v458_v54 }
 0x2f7   :  { %v463_v56 = vmul.f32 1.442695, %v460_v55 }
 0x2f9   :  { %1284 = vpow2.f32 %v463_v56 }
 0x2fa   :  { %v1279_v57 = vpop.eup %1278 }
 0x2fb   :  { %v1281_v58 = vpop.eup %1280  ;;  %v266_v59 = vsel %vm163_vm2, %v1279_v57, 0.0 }
 0x2fc   :  { %267 = vadd.xlane.f32.xlu0 %v266_v59  ;;  %v263_v60 = vsel %vm163_vm2, %v1281_v58, 0.0  ;;  %v1265_v59 = vld [vmem:[#allocation4 + $0x38] sm:$0xff]  }
 0x2fd   :  { %264 = vadd.xlane.f32.xlu1 %v263_v60  ;;  %v1266_v60 = vld [vmem:[#allocation4 + $0x40] sm:$0xff]  }
 0x2ff   :  { %v1283_v61 = vpop.eup %1282 }
 0x300   :  { %v465_v62 = vsel %vm163_vm2, %v1283_v61, 0.0 }
 0x301   :  { %466 = vadd.xlane.f32.xlu1 %v465_v62  ;;  %v1268_v62 = vld [vmem:[#allocation4 + $0x50] sm:$0xff]  }
 0x303   :  { %v1285_v63 = vpop.eup %1284 }
 0x304   :  { %v468_v1 = vsel %vm163_vm2, %v1285_v63, 0.0 }
 0x305   :  { %469 = vadd.xlane.f32.xlu0 %v468_v1 }
 0x312   :  { %1244 = vrot.lane.b32.xlu1 %v1420_v14, %s1350_s0 }
 0x31b   :  { %1249 = vrot.lane.b32.xlu0 %v1420_v14, %s1357_s16 }
 0x389   :  { %v268_v2 = vpop.xlane.xlu0 %267 }
 0x38a   :  { %v265_v5 = vpop.xlane.xlu1 %264 }
 0x38b   :  { %1286 = vrcp.f32 %v265_v5 }
 0x38c   :  { %1288 = vrcp.f32 %v268_v2 }
 0x38e   :  { %v467_v6 = vpop.xlane.xlu1 %466 }
 0x38f   :  { %1290 = vrcp.f32 %v467_v6 }
 0x392   :  { %v1245_v7 = vpop.permute.xlu1 %1244  ;;  %v470_v8 = vpop.xlane.xlu0 %469 }
 0x393   :  { %v1247_v9 = vunpack.i.h.bf16 %v1245_v7  ;;  %v1246_v10 = vunpack.i.l.bf16 %v1245_v7  ;;  %1292 = vrcp.f32 %v470_v8 }
 0x395   :  { %v1287_v11 = vpop.eup %1286  ;;  %v1206_v12 = vpack.c.bf16 %v1247_v9, %v1246_v10  ;;  %v1041_v10 = vld [vmem:[%s1512_s2 + $0x2] ss:$0 sm:$0xff] }
 0x396   :  { %v1289_v13 = vpop.eup %1288  ;;  %v1250_v15 = vpop.permute.xlu0 %1249  ;;  %v271_v16 = vmul.f32 %v1287_v11, %v1281_v58  ;;  %v1264_v58 = vld [vmem:[#allocation4 + $0x30] sm:$0xff]  }
 0x397   :  { %v1252_v17 = vunpack.i.h.bf16 %v1250_v15  ;;  %v1251_v18 = vunpack.i.l.bf16 %v1250_v15  ;;  %1207 = vmatprep.subr.bf16.mxu1 %v1206_v12  ;;  %v272_v19 = vmul.f32 %v1289_v13, %v1279_v57  ;;  %v1262_v57 = vld [vmem:[#allocation4 + $0x20] sm:$0xff]  }
 0x398   :  { %1209 = vmatpush3.bf16.msra.mxu1 %v1206_v12  ;;  %1127 = vmatprep.mubr.msk.f32.mxu1 %vm163_vm2, %v271_v16  ;;  %v1042_v16 = vld [vmem:[%s1512_s2 + $0x3] ss:$0 sm:$0xff] }
 0x399   :  { %v1291_v14 = vpop.eup %1290  ;;  %v1216_v20 = vpack.c.bf16 %v1252_v17, %v1251_v18 }
 0x39a   :  { %v473_v21 = vmul.f32 %v1291_v14, %v1283_v61  ;;  %v1267_v61 = vld [vmem:[#allocation4 + $0x48] sm:$0xff]  }
 0x39b   :  { %1128 = vmatmul.mubr.msk.f32.vlgmr.msra.gmra.mrb[2].mxu1 %vm163_vm2, %v272_v19  ;;  %1217 = vmatprep.subr.bf16.mxu1 %v1216_v20 }
 0x39c   :  { %1219 = vmatpush3.bf16.msra.mxu1 %v1216_v20  ;;  %1141 = vmatprep.mubr.msk.f32.mxu1 %vm163_vm2, %v473_v21  ;;  %v1270_v20 = vld [vmem:[#allocation4 + $0x60] sm:$0xff]   ;;  %v1271_v21 = vld [vmem:[#allocation4 + $0x68] sm:$0xff]  }
 0x39d   :  { %v1293_v22 = vpop.eup %1292  ;;  %1152 = vmatprep.subr.bf16.mxu1 %v1352_v0 }
 0x39e   :  { %v474_v23 = vmul.f32 %v1293_v22, %v1285_v63  ;;  %v1269_v63 = vld [vmem:[#allocation4 + $0x58] sm:$0xff]   ;;  %v1272_v22 = vld [vmem:[#allocation4 + $0x70] sm:$0xff]  }
 0x3a0   :  { %1142 = vmatmul.mubr.msk.f32.vlgmr.msra.gmra.mrb[4].mxu1 %vm163_vm2, %v474_v23  ;;  %v1273_v23 = vld [vmem:[#allocation4 + $0x78] sm:$0xff]  }
 0x3a1   :  { %1156 = vmatprep.mubr.msk.bf16.mxu1 %vm1353_vm0, %v1352_v0  ;;  %1153 = vmatpush3.bf16.msra.mxu1 %v1262_v57 }
 0x3a2   :  { %1154 = vmatprep.subr.bf16.mxu1 %v1352_v0 }
 0x46e   :  { %v1129_v26 = vpop.f32.mrb[2].mxu1 }
 0x46f   :  { %v351_v27 = vpop.f32.mrb[3].mxu1 }
 0x473   :  { %v1143_v28 = vpop.f32.mrb[4].mxu1 }
 0x474   :  { %v553_v29 = vpop.f32.mrb[5].mxu1 }
 0x475   :  { %v1253_v30 = vpack.i.bf16 %v1143_v28, %v553_v29 }
 0x477   :  { %1254 = vrot.lane.b32.xlu1 %v1253_v30, %s1358_s17 }
 0x4e9   :  { %v1255_v31 = vpop.permute.xlu1 %1254 }
 0x4ea   :  { %v1257_v32 = vunpack.i.h.bf16 %v1255_v31  ;;  %v1256_v33 = vunpack.i.l.bf16 %v1255_v31 }
 0x4ec   :  { %v571_v34 = vsel %vm163_vm2, %v1129_v26, %v1257_v32  ;;  %v570_v35 = vsel %vm163_vm2, %v351_v27, %v1256_v33 }
 0x4ed   :  { %v572_v36 = vpack.c.bf16 %v571_v34, %v570_v35  ;;  %v1274_v34 = vld [vmem:[#allocation4 + $0x80] sm:$0xff]   ;;  %v1275_v35 = vld [vmem:[#allocation4 + $0x88] sm:$0xff]  }
 0x4ef   :  { %1149 = vmatmul.mubr.msk.bf16.vlgmr.msra.gmra.mrb[8].mxu0 %vm67_vm1, %v572_v36  ;;  %v1047_v36 = vld [vmem:[%s1512_s2 + $0x5] ss:$0 sm:$0xff] }
 0x4f0   :  { %1176 = vmatprep.mubr.msk.bf16.mxu0 %vm1353_vm0, %v1352_v0  ;;  %1161 = vmatpush3.bf16.msra.mxu0 %v1264_v58 }
 0x4f1   :  { %1162 = vmatprep.subr.bf16.mxu0 %v1352_v0 }
 0x4f4   :  { %1163 = vmatpush3.bf16.msra.mxu0 %v1265_v59 }
 0x4f5   :  { %1164 = vmatprep.subr.bf16.mxu0 %v1352_v0 }
 0x4f8   :  { %1165 = vmatpush3.bf16.msra.mxu0 %v1266_v60 }
 0x4f9   :  { %1166 = vmatprep.subr.bf16.mxu0 %v1352_v0 }
 0x4fc   :  { %1167 = vmatpush3.bf16.msra.mxu0 %v1267_v61 }
 0x4fd   :  { %1168 = vmatprep.subr.bf16.mxu0 %v1352_v0 }
 0x500   :  { %1169 = vmatpush3.bf16.msra.mxu0 %v1268_v62 }
 0x501   :  { %1170 = vmatprep.subr.bf16.mxu0 %v1352_v0 }
 0x504   :  { %1171 = vmatpush3.bf16.msra.mxu0 %v1269_v63 }
 0x505   :  { %1172 = vmatprep.subr.bf16.mxu0 %v1352_v0 }
 0x508   :  { %1173 = vmatpush3.bf16.msra.mxu0 %v1270_v20 }
 0x509   :  { %1174 = vmatprep.subr.bf16.mxu0 %v1352_v0 }
 0x50c   :  { %1175 = vmatpush3.bf16.msra.mxu0 %v1271_v21 }
 0x5c2   :  { %v631_v38 = vpop.f32.mrb[8].mxu0 }
 0x5c3   :  { %v632_v39 = vadd.f32 %v1037_v37, %v631_v38  ;;  %v1150_v40 = vpop.f32.mrb[9].mxu0 }
 0x5c4   :  { %v634_v41 = vpop.f32.mrb[10].mxu0 }
 0x5c5   :  { %v635_v42 = vadd.f32 %v1037_v37, %v634_v41  ;;  %v1151_v43 = vpop.f32.mrb[11].mxu0  ;;  %v638_v44 = vadd.f32 %v632_v39, %v1408_v3 }
 0x5c7   :  { %v640_v45 = vsel %vm67_vm1, %v638_v44, 0.0  ;;  %v639_v46 = vadd.f32 %v635_v42, %v1410_v4  ;;  %v1263_v4 = vld [vmem:[#allocation4 + $0x28] sm:$0xff]  }
 0x5c8   :  { %641 = vadd.xlane.f32.xlu1 %v640_v45  ;;  %1155 = vmatpush3.bf16.msra.mxu1 %v1263_v4 }
 0x5c9   :  { %v643_v47 = vsel %vm67_vm1, %v639_v46, 0.0  ;;  %1180 = vmatprep.subr.bf16.mxu1 %v1352_v0 }
 0x5ca   :  { %644 = vadd.xlane.f32.xlu0 %v643_v47  ;;  %v1277_v47 = vld [vmem:[#allocation4 + $0x98] sm:$0xff]  }
 0x655   :  { %v642_v48 = vpop.xlane.xlu1 %641 }
 0x656   :  { %v647_v49 = vmul.f32 0.03125, %v642_v48  ;;  %v1056_v48 = vld [vmem:[%s1512_s2 + $0x6] ss:$0 sm:$0xff] }
 0x657   :  { %v645_v50 = vpop.xlane.xlu0 %644 }
 0x658   :  { %v649_v51 = vsub.f32 %v638_v44, %v647_v49  ;;  %v648_v52 = vmul.f32 0.03125, %v645_v50 }
 0x65a   :  { %v650_v53 = vsub.f32 %v639_v46, %v648_v52  ;;  %v651_v54 = vmul.f32 %v649_v51, %v649_v51  ;;  %v1276_v46 = vld [vmem:[#allocation4 + $0x90] sm:$0xff]  }
 0x65c   :  { %v653_v55 = vsel %vm67_vm1, %v651_v54, 0.0  ;;  %v652_v56 = vmul.f32 %v650_v53, %v650_v53 }
 0x65d   :  { %654 = vadd.xlane.f32.xlu0 %v653_v55 }
 0x65e   :  { %v656_v3 = vsel %vm67_vm1, %v652_v56, 0.0 }
 0x65f   :  { %657 = vadd.xlane.f32.xlu1 %v656_v3 }
 0x6ea   :  { %v655_v1 = vpop.xlane.xlu0 %654 }
 0x6eb   :  { %v659_v2 = vmul.f32 0.03125, %v655_v1 }
 0x6ec   :  { %v658_v5 = vpop.xlane.xlu1 %657 }
 0x6ed   :  { %v661_v6 = vadd.f32 1e-05, %v659_v2  ;;  %v660_v7 = vmul.f32 0.03125, %v658_v5 }
 0x6ef   :  { %1294 = vrsqrt.f32 %v661_v6  ;;  %v662_v8 = vadd.f32 1e-05, %v660_v7 }
 0x6f1   :  { %1296 = vrsqrt.f32 %v662_v8 }
 0x6f9   :  { %v1295_v9 = vpop.eup %1294 }
 0x6fa   :  { %v665_v11 = vmul.f32 %v1295_v9, %v649_v51 }
 0x6fb   :  { %v1297_v12 = vpop.eup %1296 }
 0x6fc   :  { %v672_v13 = vmul.f32 %v1041_v10, %v665_v11  ;;  %v666_v15 = vmul.f32 %v1297_v12, %v650_v53 }
 0x6fe   :  { %v673_v17 = vmul.f32 %v1041_v10, %v666_v15  ;;  %v679_v18 = vadd.f32 %v1042_v16, %v672_v13 }
 0x700   :  { %v680_v14 = vadd.f32 %v1042_v16, %v673_v17 }
 0x702   :  { %v681_v19 = vpack.c.bf16 %v680_v14, %v679_v18 }
 0x704   :  { %1157 = vmatmul.mubr.msk.bf16.vlgmr.msra.gmra.mrb[8].mxu1 %vm67_vm1, %v681_v19 }
 0x705   :  { %1188 = vmatprep.mubr.msk.bf16.mxu1 %vm1353_vm0, %v1352_v0  ;;  %1181 = vmatpush3.bf16.msra.mxu1 %v1272_v22 }
 0x706   :  { %1182 = vmatprep.subr.bf16.mxu1 %v1352_v0 }
 0x709   :  { %1183 = vmatpush3.bf16.msra.mxu1 %v1273_v23 }
 0x70a   :  { %1184 = vmatprep.subr.bf16.mxu1 %v1352_v0 }
 0x70d   :  { %1185 = vmatpush3.bf16.msra.mxu1 %v1274_v34 }
 0x70e   :  { %1186 = vmatprep.subr.bf16.mxu1 %v1352_v0 }
 0x711   :  { %1187 = vmatpush3.bf16.msra.mxu1 %v1275_v35 }
 0x712   :  { %1192 = vmatprep.subr.bf16.mxu1 %v1352_v0 }
 0x7d7   :  { %v740_v25 = vpop.f32.mrb[8].mxu1 }
 0x7d8   :  { %v741_v26 = vadd.f32 %v1043_v24, %v740_v25  ;;  %v1158_v27 = vpop.f32.mrb[9].mxu1 }
 0x7d9   :  { %v743_v28 = vpop.f32.mrb[10].mxu1 }
 0x7da   :  { %v744_v29 = vadd.f32 %v1043_v24, %v743_v28  ;;  %v1159_v30 = vpop.f32.mrb[11].mxu1  ;;  %v747_v31 = vmax.f32 %v741_v26, 0.0 }
 0x7dc   :  { %v748_v32 = vmax.f32 %v744_v29, 0.0 }
 0x7de   :  { %v749_v33 = vpack.c.bf16 %v748_v32, %v747_v31 }
 0x7e0   :  { %1177 = vmatmul.mubr.bf16.vlgmr.msra.gmra.mrb[12].mxu0 %v749_v33 }
 0x8b3   :  { %v853_v37 = vpop.f32.mrb[12].mxu0 }
 0x8b4   :  { %v854_v38 = vadd.f32 %v1047_v36, %v853_v37  ;;  %v1178_v39 = vpop.f32.mrb[13].mxu0 }
 0x8b5   :  { %v856_v40 = vpop.f32.mrb[14].mxu0 }
 0x8b6   :  { %v857_v41 = vadd.f32 %v1047_v36, %v856_v40  ;;  %v1179_v42 = vpop.f32.mrb[15].mxu0  ;;  %v860_v43 = vmax.f32 %v854_v38, 0.0 }
 0x8b8   :  { %v861_v44 = vmax.f32 %v857_v41, 0.0 }
 0x8ba   :  { %v862_v45 = vpack.c.bf16 %v861_v44, %v860_v43 }
 0x8bc   :  { %1189 = vmatmul.mubr.msk.bf16.vlgmr.msra.gmra.mrb[12].mxu1 %vm900_vm6, %v862_v45 }
 0x8bd   :  { %1196 = vmatprep.mubr.msk.bf16.mxu1 %vm1353_vm0, %v1352_v0  ;;  %1193 = vmatpush3.bf16.msra.mxu1 %v1276_v46 }
 0x8be   :  { %1194 = vmatprep.subr.bf16.mxu1 %v1352_v0  ;;  %v1062_v0 = vld [vmem:[%s1512_s2 + $0x7] ss:$0 sm:$0xff] }
 0x8c1   :  { %1195 = vmatpush3.bf16.msra.mxu1 %v1277_v47 }
 0x98f   :  { %v938_v49 = vpop.f32.mrb[12].mxu1 }
 0x990   :  { %v939_v50 = vadd.f32 %v1056_v48, %v938_v49  ;;  %v1190_v51 = vpop.f32.mrb[13].mxu1 }
 0x991   :  { %v941_v52 = vpop.f32.mrb[14].mxu1 }
 0x992   :  { %v942_v53 = vadd.f32 %v1056_v48, %v941_v52  ;;  %v1191_v54 = vpop.f32.mrb[15].mxu1  ;;  %v945_v55 = vmax.f32 %v939_v50, 0.0 }
 0x994   :  { %v946_v56 = vmax.f32 %v942_v53, 0.0 }
 0x996   :  { %v947_v3 = vpack.c.bf16 %v946_v56, %v945_v55 }
 0x998   :  { %1197 = vmatmul.mubr.msk.bf16.vlgmr.msra.gmra.mrb[16].mxu1 %vm67_vm1, %v947_v3 }
 0xa6b   :  { %v1006_v57 = vpop.f32.mrb[16].mxu1 }
 0xa6c   :  { %v1007_v4 = vadd.f32 %v1062_v0, %v1006_v57  ;;  %v1198_v58 = vpop.f32.mrb[17].mxu1 }
 0xa6d   :  { %v1009_v59 = vpop.f32.mrb[18].mxu1 }
 0xa6e   :  { %1013 = vst [vmem:[%s1513_s3] sm:$0xff] %v1007_v4  ;;  %v1010_v60 = vadd.f32 %v1062_v0, %v1009_v59  ;;  %v1199_v61 = vpop.f32.mrb[19].mxu1 }
 0xa70   :  { %1014 = vst [vmem:[%s1513_s3 + $0x8] sm:$0xff] %v1010_v60 }
 0xa71   :  { %1019 = vsyncpa [#allocation3], 1 }
 0xa72   :  { %1020 = vsyncpa [#allocation5], 1 }

</bundles_post_ra>
